<compile_context>
chip_gen: v6e
topology: v6e:2x2x1
jax: 0.10.0
libtpu: 0.0.40
codegen_flags: <defaults>
</compile_context>

<pallas_src>
import functools

import jax
import jax.numpy as jnp
from jax.experimental import pallas as pl
from jax.experimental.pallas import tpu as pltpu

RMS_EPS = 1e-6


def lm_head_kernel(h_ref, wnorm_ref, whead_ref, tok_ref,
                   hn_sc, max_sc, idx_sc, *, tv, vocab):
    """Grid = (seq_tiles, vocab_tiles); vocab axis is a running-argmax reduction.

    h_ref:     (ts, H)   hidden states tile
    wnorm_ref: (1, H)    RMSNorm weight
    whead_ref: (tv, H)   lm_head weight tile in native (V, H) layout
    tok_ref:   (ts, 1)   int32 argmax token output
    hn_sc:     (ts, H)   normalized hidden scratch (input dtype)
    max_sc:    (ts, 1)   running max logit (f32)
    idx_sc:    (ts, 1)   running argmax index (i32)
    """
    j = pl.program_id(1)

    # --- once per seq tile: RMSNorm (fp32 math, cast back) + reset reduction ---
    @pl.when(j == 0)
    def _():
        h = h_ref[...].astype(jnp.float32)                    # (ts, H)
        var = jnp.mean(h * h, axis=-1, keepdims=True)         # (ts, 1)
        hn = h * jax.lax.rsqrt(var + RMS_EPS)
        hn = hn * wnorm_ref[...].astype(jnp.float32)          # broadcast (1, H)
        hn_sc[...] = hn.astype(hn_sc.dtype)
        max_sc[...] = jnp.full_like(max_sc, -jnp.inf)
        idx_sc[...] = jnp.zeros_like(idx_sc)

    # --- lm_head matmul on the MXU: (ts, H) x (tv, H)^T -> (ts, tv), f32 acc ---
    logits = jax.lax.dot_general(
        hn_sc[...], whead_ref[...],
        dimension_numbers=(((1,), (1,)), ((), ())),
        preferred_element_type=jnp.float32)                   # (ts, tv)

    # --- mask vocab padding (V not a multiple of tv) to -inf ---
    lane_ids = jax.lax.broadcasted_iota(jnp.int32, logits.shape, 1)
    global_ids = lane_ids + j * tv
    logits = jnp.where(global_ids < vocab, logits, -jnp.inf)

    # --- running top-1 over vocab tiles (earliest index on ties, like argmax) ---
    tile_max = jnp.max(logits, axis=-1, keepdims=True)        # (ts, 1)
    masked_ids = jnp.where(logits == tile_max, global_ids,
                           jnp.iinfo(jnp.int32).max)
    tile_arg = jnp.min(masked_ids, axis=-1, keepdims=True)    # (ts, 1)

    better = tile_max > max_sc[...]
    idx_sc[...] = jnp.where(better, tile_arg, idx_sc[...])
    max_sc[...] = jnp.where(better, tile_max, max_sc[...])

    @pl.when(j == pl.num_programs(1) - 1)
    def _():
        tok_ref[...] = idx_sc[...]


def lm_head_topk1(hidden_states, norm_weight, head_weight, *, ts=None, tv=512):
    """hidden_states: (S, H); norm_weight: (H,); head_weight: (V, H) PyTorch layout.

    Returns (S, 1) int32 argmax token indices.
    """
    S, H = hidden_states.shape
    V, H2 = head_weight.shape
    assert H == H2, (H, H2)

    # Seq tile: cover the whole sequence by default so the head weight is
    # streamed from HBM exactly once.
    if ts is None or ts >= S:
        ts = S
    s_tiles = -(-S // ts)
    S_pad = s_tiles * ts
    if S_pad != S:
        hidden_states = jnp.pad(hidden_states, ((0, S_pad - S), (0, 0)))

    # Vocab padding so the grid is exact; padded rows are masked to -inf in-kernel.
    v_tiles = -(-V // tv)
    V_pad = v_tiles * tv
    if V_pad != V:
        head_weight = jnp.pad(head_weight, ((0, V_pad - V), (0, 0)))

    wnorm2d = norm_weight.reshape(1, H)
    itemsize = jnp.dtype(head_weight.dtype).itemsize

    # Modest VMEM budget: double-buffered weight block + scratches + headroom.
    weight_block_bytes = tv * H * itemsize
    needed = 2 * weight_block_bytes + 4 * ts * H * 4 + (2 << 20)
    vmem_limit = int(min(max(needed, 32 * 1024 * 1024), 100 * 1024 * 1024))

    cost = pl.CostEstimate(
        flops=2 * S * H * V,
        transcendentals=S,
        bytes_accessed=V * H * itemsize
        + S * H * jnp.dtype(hidden_states.dtype).itemsize
        + S * 4,
    )

    kernel = functools.partial(lm_head_kernel, tv=tv, vocab=V)
    out = pl.pallas_call(
        kernel,
        out_shape=jax.ShapeDtypeStruct((S_pad, 1), jnp.int32),
        grid_spec=pltpu.PrefetchScalarGridSpec(
            num_scalar_prefetch=0,
            grid=(s_tiles, v_tiles),
            in_specs=[
                pl.BlockSpec((ts, H), lambda i, j: (i, 0)),
                pl.BlockSpec((1, H), lambda i, j: (0, 0)),
                pl.BlockSpec((tv, H), lambda i, j: (j, 0)),
            ],
            out_specs=pl.BlockSpec((ts, 1), lambda i, j: (i, 0)),
            scratch_shapes=[
                pltpu.VMEM((ts, H), hidden_states.dtype),
                pltpu.VMEM((ts, 1), jnp.float32),
                pltpu.VMEM((ts, 1), jnp.int32),
            ],
        ),
        compiler_params=pltpu.CompilerParams(
            dimension_semantics=("parallel", "arbitrary"),
            vmem_limit_bytes=vmem_limit,
        ),
        cost_estimate=cost,
    )(hidden_states, wnorm2d, head_weight)

    return out[:S]


def lm_head_ref(hidden_states, norm_weight, head_weight):
    """Pure-JAX reference mirroring the PyTorch forward (weight in (V, H))."""
    h = hidden_states.astype(jnp.float32)
    var = jnp.mean(h * h, axis=-1, keepdims=True)
    hn = (h * jax.lax.rsqrt(var + RMS_EPS)) * norm_weight.astype(jnp.float32)
    hn = hn.astype(hidden_states.dtype)
    logits = jnp.dot(hn, head_weight.T,
                     preferred_element_type=jnp.float32).astype(jnp.float32)
    return jnp.argmax(logits, axis=-1, keepdims=True).astype(jnp.int32)


if __name__ == "__main__":
    # Small synthetic shapes: seq=8, hidden=128, vocab=300 (non-multiple of tv
    # to exercise the padding mask). Real model: hidden=3584, vocab=151666.
    S, H, V = 8, 128, 300
    key = jax.random.PRNGKey(0)
    k1, k2, k3 = jax.random.split(key, 3)

    hidden_states = jax.random.normal(k1, (S, H), dtype=jnp.bfloat16)
    norm_weight = (1.0 + 0.05 * jax.random.normal(k2, (H,))).astype(jnp.bfloat16)
    # PyTorch lm_head weight is (V, H); the kernel consumes it in that layout.
    head_weight = (0.05 * jax.random.normal(k3, (V, H))).astype(jnp.bfloat16)

    # tv=128 here so the toy vocab spans multiple tiles with a masked tail.
    token = lm_head_topk1(hidden_states, norm_weight, head_weight, tv=128)
    token = jax.block_until_ready(token)

    ref = lm_head_ref(hidden_states, norm_weight, head_weight)
    assert token.shape == (S, 1) and token.dtype == jnp.int32
    assert bool(jnp.all(token < V)), token
    assert bool(jnp.all(token == ref)), (token, ref)

    print("KERNEL_OK")
</pallas_src>

<mosaic_0001>
module attributes {stable_mosaic.version = 11 : i64} {
  func.func @lm_head_kernel(%arg0: i32, %arg1: i32, %arg2: memref<8x128xbf16, #tpu.memory_space<vmem>>, %arg3: memref<1x128xbf16, #tpu.memory_space<vmem>>, %arg4: memref<128x128xbf16, #tpu.memory_space<vmem>>, %arg5: memref<8x1xi32, #tpu.memory_space<vmem>>, %arg6: memref<8x128xbf16, #tpu.memory_space<vmem>>, %arg7: memref<8x1xf32, #tpu.memory_space<vmem>>, %arg8: memref<8x1xi32, #tpu.memory_space<vmem>>) attributes {dimension_semantics = [#tpu.dimension_semantics<parallel>, #tpu.dimension_semantics<arbitrary>], iteration_bounds = array<i64: 1, 3>, scalar_prefetch = 0 : i64, scratch_operands = 3 : i64, tpu.core_type = #tpu.core_type<tc>, window_params = [{transform_indices = @transform_0, window_bounds = array<i64: 8, 128>}, {pipeline_mode = #tpu.pipeline_mode<synchronous>, transform_indices = @transform_1, window_bounds = array<i64: 1, 128>}, {transform_indices = @transform_2, window_bounds = array<i64: 128, 128>}, {transform_indices = @transform_3, window_bounds = array<i64: 8, 1>}]} {
    %c0_i32 = arith.constant 0 : i32
    %0 = arith.cmpi eq, %arg1, %c0_i32 : i32
    %1 = arith.extui %0 : i1 to i32
    %c0_i32_0 = arith.constant 0 : i32
    %2 = arith.cmpi ne, %1, %c0_i32_0 : i32
    scf.if %2 {
      %c0_18 = arith.constant 0 : index
      %c0_19 = arith.constant 0 : index
      %33 = vector.load %arg2[%c0_18, %c0_19] : memref<8x128xbf16, #tpu.memory_space<vmem>>, vector<8x128xbf16>
      %34 = arith.extf %33 : vector<8x128xbf16> to vector<8x128xf32>
      %35 = arith.mulf %34, %34 : vector<8x128xf32>
      %cst_20 = arith.constant dense<0.000000e+00> : vector<8xf32>
      %36 = vector.multi_reduction <add>, %35, %cst_20 [1] : vector<8x128xf32> to vector<8xf32>
      %37 = vector.shape_cast %36 : vector<8xf32> to vector<8x1xf32>
      %cst_21 = arith.constant 1.280000e+02 : f32
      %38 = vector.broadcast %cst_21 : f32 to vector<8x1xf32>
      %39 = arith.divf %37, %38 : vector<8x1xf32>
      %cst_22 = arith.constant 9.99999997E-7 : f32
      %40 = vector.broadcast %cst_22 : f32 to vector<8x1xf32>
      %41 = arith.addf %39, %40 : vector<8x1xf32>
      %42 = math.rsqrt %41 : vector<8x1xf32>
      %43 = vector.broadcast %42 : vector<8x1xf32> to vector<8x128xf32>
      %44 = arith.mulf %34, %43 : vector<8x128xf32>
      %c0_23 = arith.constant 0 : index
      %c0_24 = arith.constant 0 : index
      %45 = vector.load %arg3[%c0_23, %c0_24] : memref<1x128xbf16, #tpu.memory_space<vmem>>, vector<1x128xbf16>
      %46 = arith.extf %45 : vector<1x128xbf16> to vector<1x128xf32>
      %47 = vector.broadcast %46 : vector<1x128xf32> to vector<8x128xf32>
      %48 = arith.mulf %44, %47 : vector<8x128xf32>
      %49 = arith.truncf %48 : vector<8x128xf32> to vector<8x128xbf16>
      %c0_25 = arith.constant 0 : index
      %c0_26 = arith.constant 0 : index
      %50 = vector.load %arg6[%c0_25, %c0_26] : memref<8x128xbf16, #tpu.memory_space<vmem>>, vector<8x128xbf16>
      tpu.vector_store %arg6[%c0_25, %c0_26], %49 {strides = array<i32>} : memref<8x128xbf16, #tpu.memory_space<vmem>>, vector<8x128xbf16>,
      %cst_27 = arith.constant 0xFF800000 : f32
      %51 = vector.broadcast %cst_27 : f32 to vector<8x1xf32>
      %c0_28 = arith.constant 0 : index
      %c0_29 = arith.constant 0 : index
      %52 = vector.load %arg7[%c0_28, %c0_29] : memref<8x1xf32, #tpu.memory_space<vmem>>, vector<8x1xf32>
      tpu.vector_store %arg7[%c0_28, %c0_29], %51 {strides = array<i32>} : memref<8x1xf32, #tpu.memory_space<vmem>>, vector<8x1xf32>,
      %c0_i32_30 = arith.constant 0 : i32
      %53 = vector.broadcast %c0_i32_30 : i32 to vector<8x1xi32>
      %c0_31 = arith.constant 0 : index
      %c0_32 = arith.constant 0 : index
      %54 = vector.load %arg8[%c0_31, %c0_32] : memref<8x1xi32, #tpu.memory_space<vmem>>, vector<8x1xi32>
      tpu.vector_store %arg8[%c0_31, %c0_32], %53 {strides = array<i32>} : memref<8x1xi32, #tpu.memory_space<vmem>>, vector<8x1xi32>,
    } else {
    }
    %c0 = arith.constant 0 : index
    %c0_1 = arith.constant 0 : index
    %3 = vector.load %arg6[%c0, %c0_1] : memref<8x128xbf16, #tpu.memory_space<vmem>>, vector<8x128xbf16>
    %c0_2 = arith.constant 0 : index
    %c0_3 = arith.constant 0 : index
    %4 = vector.load %arg4[%c0_2, %c0_3] : memref<128x128xbf16, #tpu.memory_space<vmem>>, vector<128x128xbf16>
    %cst = arith.constant dense<0.000000e+00> : vector<8x128xf32>
    %5 = tpu.matmul %3, %4, %cst {dimension_numbers = #tpu.dot_dimension_numbers<[1], [1], [0], [0], [0, 0, 1, 0], [], []>} : vector<8x128xbf16>, vector<128x128xbf16>, vector<8x128xf32> -> vector<8x128xf32>
    %6 = tpu.iota {dimensions = array<i32: 1>} : vector<8x128xi32>
    %c128_i32 = arith.constant 128 : i32
    %7 = arith.muli %arg1, %c128_i32 : i32
    %8 = vector.broadcast %7 : i32 to vector<8x128xi32>
    %9 = arith.addi %6, %8 : vector<8x128xi32>
    %c300_i32 = arith.constant 300 : i32
    %10 = vector.broadcast %c300_i32 : i32 to vector<8x128xi32>
    %11 = arith.cmpi slt, %9, %10 : vector<8x128xi32>
    %cst_4 = arith.constant 0xFF800000 : f32
    %12 = vector.broadcast %cst_4 : f32 to vector<8x128xf32>
    %13 = arith.select %11, %5, %12 : vector<8x128xi1>, vector<8x128xf32>
    %cst_5 = arith.constant dense<0xFF800000> : vector<8xf32>
    %14 = vector.multi_reduction <maximumf>, %13, %cst_5 [1] : vector<8x128xf32> to vector<8xf32>
    %15 = vector.shape_cast %14 : vector<8xf32> to vector<8x1xf32>
    %16 = vector.broadcast %15 : vector<8x1xf32> to vector<8x128xf32>
    %17 = arith.cmpf oeq, %13, %16 : vector<8x128xf32>
    %c2147483647_i32 = arith.constant 2147483647 : i32
    %18 = vector.broadcast %c2147483647_i32 : i32 to vector<8x128xi32>
    %19 = arith.select %17, %9, %18 : vector<8x128xi1>, vector<8x128xi32>
    %cst_6 = arith.constant dense<2147483647> : vector<8xi32>
    %20 = vector.multi_reduction <minsi>, %19, %cst_6 [1] : vector<8x128xi32> to vector<8xi32>
    %21 = vector.shape_cast %20 : vector<8xi32> to vector<8x1xi32>
    %c0_7 = arith.constant 0 : index
    %c0_8 = arith.constant 0 : index
    %22 = vector.load %arg7[%c0_7, %c0_8] : memref<8x1xf32, #tpu.memory_space<vmem>>, vector<8x1xf32>
    %23 = arith.cmpf ogt, %15, %22 : vector<8x1xf32>
    %c0_9 = arith.constant 0 : index
    %c0_10 = arith.constant 0 : index
    %24 = vector.load %arg8[%c0_9, %c0_10] : memref<8x1xi32, #tpu.memory_space<vmem>>, vector<8x1xi32>
    %25 = arith.select %23, %21, %24 : vector<8x1xi1>, vector<8x1xi32>
    %c0_11 = arith.constant 0 : index
    %c0_12 = arith.constant 0 : index
    %26 = vector.load %arg8[%c0_11, %c0_12] : memref<8x1xi32, #tpu.memory_space<vmem>>, vector<8x1xi32>
    tpu.vector_store %arg8[%c0_11, %c0_12], %25 {strides = array<i32>} : memref<8x1xi32, #tpu.memory_space<vmem>>, vector<8x1xi32>,
    %c0_13 = arith.constant 0 : index
    %c0_14 = arith.constant 0 : index
    %27 = vector.load %arg7[%c0_13, %c0_14] : memref<8x1xf32, #tpu.memory_space<vmem>>, vector<8x1xf32>
    %28 = arith.select %23, %15, %27 : vector<8x1xi1>, vector<8x1xf32>
    %c0_15 = arith.constant 0 : index
    %c0_16 = arith.constant 0 : index
    %29 = vector.load %arg7[%c0_15, %c0_16] : memref<8x1xf32, #tpu.memory_space<vmem>>, vector<8x1xf32>
    tpu.vector_store %arg7[%c0_15, %c0_16], %28 {strides = array<i32>} : memref<8x1xf32, #tpu.memory_space<vmem>>, vector<8x1xf32>,
    %c2_i32 = arith.constant 2 : i32
    %30 = arith.cmpi eq, %arg1, %c2_i32 : i32
    %31 = arith.extui %30 : i1 to i32
    %c0_i32_17 = arith.constant 0 : i32
    %32 = arith.cmpi ne, %31, %c0_i32_17 : i32
    scf.if %32 {
      %c0_18 = arith.constant 0 : index
      %c0_19 = arith.constant 0 : index
      %33 = vector.load %arg8[%c0_18, %c0_19] : memref<8x1xi32, #tpu.memory_space<vmem>>, vector<8x1xi32>
      %c0_20 = arith.constant 0 : index
      %c0_21 = arith.constant 0 : index
      %34 = vector.load %arg5[%c0_20, %c0_21] : memref<8x1xi32, #tpu.memory_space<vmem>>, vector<8x1xi32>
      tpu.vector_store %arg5[%c0_20, %c0_21], %33 {strides = array<i32>} : memref<8x1xi32, #tpu.memory_space<vmem>>, vector<8x1xi32>,
    } else {
    }
    return
  }
  func.func @transform_0(%arg0: i32, %arg1: i32) -> (i32, i32) {
    %c0_i32 = arith.constant 0 : i32
    %c0_i32_0 = arith.constant 0 : i32
    return %arg0, %c0_i32 : i32, i32
  }
  func.func @transform_1(%arg0: i32, %arg1: i32) -> (i32, i32) {
    %c0_i32 = arith.constant 0 : i32
    %c0_i32_0 = arith.constant 0 : i32
    %c0_i32_1 = arith.constant 0 : i32
    return %c0_i32, %c0_i32_0 : i32, i32
  }
  func.func @transform_2(%arg0: i32, %arg1: i32) -> (i32, i32) {
    %c0_i32 = arith.constant 0 : i32
    %c0_i32_0 = arith.constant 0 : i32
    return %arg1, %c0_i32 : i32, i32
  }
  func.func @transform_3(%arg0: i32, %arg1: i32) -> (i32, i32) {
    %c0_i32 = arith.constant 0 : i32
    %c0_i32_0 = arith.constant 0 : i32
    return %arg0, %c0_i32 : i32, i32
  }
}

</mosaic_0001>

<bundles_post_ra>
// kernel: tpu_custom_call.1
= control target key start
LH: loop header
LB: loop body
LE: loop exit
PB: predicated region body
PF: predicated region fallthrough
CT: control target
= control target key end

     0   :  { %8 = vsyncpa [#allocation6], 0  ;;  %s892_s0 = inlined_call_operand.hbm [shape: bf16[8,128], index: 0, kind: input, shape index: {}]   ;;  %s893_s1 = inlined_call_operand.vmem [shape: bf16[1,128], index: 1, kind: input, shape index: {}]   ;;  %s894_s2 = inlined_call_operand.hbm [shape: bf16[384,128], index: 2, kind: input, shape index: {}]   ;;  %s895_s3 = inlined_call_operand.vmem [shape: s32[8,1], index: 3, kind: output, shape index: {}]  }
   0x1   :  { %9 = vsyncpa [#allocation8], 0 }
   0x2   :  { %11 = vsyncpa [#allocation8 + $0x1], 0  ;;  %s752_s12 = smov 0   ;;  %s754_s13 = smov 0  }
   0x3   :  { %s756_s14 = smov 0   ;;  %s758_s15 = smov 0  }
   0x4   :  { %s760_s16 = smov 0   ;;  %s762_s17 = smov 0  }
   0x5 LB: > { %s478_s18 = sadd.s32 4294967295, %s722_s17   ;;  %s83_s19 = sadd.s32 1, %s710_s14  ;;  %s722_s17 = sphi %s762_s17, %s17_s17   ;;  %s718_s16 = sphi %s760_s16, %s909_s16   ;;  %s714_s15 = sphi %s758_s15, %s908_s15   ;;  %s710_s14 = sphi %s756_s14, %s907_s14   ;;  %s706_s13 = sphi %s754_s13, %s906_s13   ;;  %s702_s12 = sphi %s752_s12, %s905_s12  }
   0x6   : > { %p90_p0 = scmp.ne.s32.totalorder %s710_s14, %s706_s13  ;;  %p91_p1 = scmp.eq.s32.totalorder %s722_s17, 0 }
   0x7   : > { %p96_p2 = scmp.ne.s32.totalorder %s706_s13, %s702_s12  ;;  %p786_p3 = scmp.eq.s32.totalorder %s478_s18, 0 }
   0x8   : > { %p92_p4 = por %p91_p1, %p90_p0  ;;  %p479_p5 = scmp.ge.s32.totalorder %s722_s17, 1 }
   0x9   : > { %p793_p6 = por %p786_p3, %p96_p2  ;;  %p133_p7 = scmp.lt.s32.totalorder %s722_s17, 4 }
   0xa   : > { %s724_s23 = smov [#allocation5]   ;;  %p547_p10 = scmp.lt.s32.totalorder %s722_s17, 3 }
   0xb   : > { %s899_s21 = scalar_select %p793_p6, 1, 0 }
   0xc   : > { %p798_p8 = pnand %p479_p5, %p133_p7  ;;  %s148_s24 = sshll.u32 %s724_s23, 4  ;;  %s149_s24 = int_to_ptr.vmem [resolvable:$true] %s148_s24 }
   0xd   : > { %s162_s25 = sand.u32 1, %s710_s14   ;;  %p808_p12 = pnand %p547_p10, %p92_p4 }
   0xe   : > { %s900_s22 = scalar_select %p798_p8, 1, 0 }
   0xf   : > { %p538_p9 = pneg %p798_p8  ;;  %s625_s27 = scalar_lea.vmem %s149_s24, 64 }
  0x10   : > { %p626_p0 = scmp.ne.s32.totalorder %s149_s24, %s625_s27  ;;  %p633_p5 = scmp.lt.s32.totalorder %s149_s24, %s149_s24 }
  0x11   : > { %p539_p11 = pnand %p538_p9, %p786_p3  ;;  %p634_p7 = scmp.lt.s32.totalorder %s625_s27, %s625_s27 }
  0x13   : > { %p616_p13 = pneg %p539_p11  ;;  %p635_p6 = por %p634_p7, %p633_p5 }
  0x15   : > { %p628_p1 = pnand %p626_p0, %p616_p13 }
  0x17   : > { %p629_p2 = pneg %p628_p1 }
  0x19   : > { %p636_p8 = pnand %p635_p6, %p629_p2 }
  0x1b   : > { %639 = shalt.err (!%p636_p8)
}
  0x1c   : > { %541 = dma.hbm_to_vmem [thread:$0]  (!%p539_p11), %s892_s0, 64, %s149_s24, [#allocation6]  }
  0x1d   : > { %s26_s30 = sadd.s32 1, %s718_s16  ;;  %s482_s4 = sshll.u32 %s162_s25, 6 }
  0x1e   : > { %p27_p4 = scmp.ge.s32.totalorder %s26_s30, 3  ;;  %s502_s5 = sshll.u32 %s718_s16, 10 }
  0x1f   : > { %s166_s6 = scalar_lea.vmem [#allocation7], %s482_s4  ;;  %s172_s10 = scalar_lea.hbm %s894_s2, %s502_s5 }
  0x20   : > { %s173_s7 = sshll.u32 %s166_s6, 4  ;;  %s911_s30 = smov (%p27_p4, %s26_s30), 0  ;;  %s174_s7 = int_to_ptr.vmem [resolvable:$true] %s173_s7 }
  0x21   : > { %s80_s11 = ssub.s32 %s718_s16, %s911_s30  ;;  %s163_s18 = scalar_lea.sflag [#allocation8], %s162_s25 }
  0x22   : > { %p824_p6 = scmp.eq.s32.totalorder %s80_s11, 0  ;;  %p642_p8 = pneg %p808_p12 }
  0x23   : > { %s653_s23 = scalar_lea.vmem %s174_s7, 1024  ;;  %s725_s24 = smov [#allocation7]  }
  0x24   : > { %p654_p9 = scmp.ne.s32.totalorder %s174_s7, %s653_s23  ;;  %s658_s27 = sshll.u32 %s725_s24, 4  ;;  %s659_s27 = int_to_ptr.vmem [resolvable:$false] %s658_s27 }
  0x25   : > { %s660_s28 = scalar_lea.vmem %s659_s27, 2048  ;;  %p661_p13 = scmp.lt.s32.totalorder %s174_s7, %s659_s27 }
  0x26   : > { %p656_p10 = pnand %p654_p9, %p642_p8  ;;  %p662_p0 = scmp.lt.s32.totalorder %s660_s28, %s653_s23 }
  0x28   : > { %p657_p11 = pneg %p656_p10  ;;  %p663_p1 = por %p662_p0, %p661_p13 }
  0x2a   : > { %p664_p2 = pnand %p663_p1, %p657_p11 }
  0x2c   : > { %667 = shalt.err (!%p664_p2)
}
  0x2d   : > { %s726_s29 = smov 64   ;;  %s727_s25 = smov 4  }
  0x2e   : > { %545 = dma.hbm_to_vmem [thread:$0]  (!%p808_p12), %s172_s10, 1024, %s174_s7, %s163_s18, %s726_s29, %s726_s29, %s727_s25  }
  0x2f   : > { %s837_s4 = scalar_select %p824_p6, %s710_s14, %s83_s19  }
  0x30   : > { %p903_p5 = scmp.ne.s32.totalorder %s900_s22, 0 }
  0x32   : > { %185 = sbr.rel (%p903_p5) target bundleno = 930 (0x3a2), region = 32 }
  0x37   : > { %693 = dma.done.wait (%p786_p3), [#allocation6], 64  }
  0x38   : > { %695 = vsyncadd (%p786_p3), [#allocation6], 4294967232  ;;  %s191_s5 = sand.u32 1, %s706_s13   ;;  %p904_p12 = scmp.ne.s32.totalorder %s899_s21, 0 }
  0x39   : > { %s487_s6 = sshll.u32 %s191_s5, 6  ;;  %s192_s8 = scalar_lea.sflag [#allocation8], %s191_s5 }
  0x3a   : > { %s846_s26 = scalar_lea.vmem [#allocation7], %s487_s6 }
  0x3b   : > { %697 = dma.done.wait (%p904_p12), %s192_s8, 1024  }
  0x3c   : > { %699 = vsyncadd (%p904_p12), %s192_s8, 4294966272  ;;  %p488_p7 = scmp.ne.s32.totalorder %s714_s15, 0 }
  0x3e   : > { %226 = sbr.rel (%p488_p7) target bundleno = 235 (0xeb), region = 44 }
  0x43   : > { %v227_v0 = vld [vmem:[#allocation5] sm:$0xf]  ;;  %vm246_vm0 = vcmask 7168   ;;  %v728_v3 = vmov -inf   ;;  %v729_v4 = vmov 0   ;;  %v239_v8 = vlaneseq }
  0x44   : > { %v228_v1 = vunpack.c.l.bf16 %v227_v0  ;;  %247 = vst.msk [vmem:[#allocation3] sm:$0xff] %vm246_vm0, %v728_v3  ;;  %248 = vst.msk [vmem:[#allocation4] sm:$0xff] %vm246_vm0, %v729_v4  ;;  %v237_v10 = vld [vmem:[%s893_s1] sm:$0x1] }
  0x45   : > { %v240_v9 = vshrl.u32 %v239_v8, 7  ;;  %v238_v11 = vunpack.c.l.bf16 %v237_v10 }
  0x46   : > { %v229_v2 = vmul.f32 %v228_v1, %v228_v1 }
  0x47   : > { %v241_v12 = vsub.s32 0, %v240_v9 }
  0x48   : > { %230 = vadd.xlane.f32.xlu0 %v229_v2 }
  0x49   : > { %v242_v13 = vrot.slane %v238_v11, %v241_v12 }
  0xd1   : > { %v231_v5 = vpop.xlane.xlu0 %230 }
  0xd2   : > { %v233_v6 = vmul.f32 0.0078125, %v231_v5 }
  0xd4   : > { %v234_v7 = vadd.f32 1e-06, %v233_v6 }
  0xd6   : > { %604 = vrsqrt.f32 %v234_v7 }
  0xe3   : > { %v605_v14 = vpop.eup %604 }
  0xe4   : > { %v236_v15 = vmul.f32 %v605_v14, %v228_v1 }
  0xe6   : > { %v243_v16 = vmul.f32 %v242_v13, %v236_v15 }
  0xe8   : > { %v244_v17 = vpack.c.bf16 %v243_v16, %v243_v16 }
  0xea   : > { %245 = vst [vmem:[#allocation2] sm:$0xf] %v244_v17 }
  0xeb PF: > { %v606_v18 = vld [vmem:[%s846_s26 + $0x38] sm:$0xff]   ;;  %v730_v19 = vmov 0.0   ;;  %vm731_vm1 = vmmov 0   ;;  %v607_v20 = vld [vmem:[%s846_s26 + $0x30] sm:$0xff]   ;;  %v608_v21 = vld [vmem:[%s846_s26 + $0x28] sm:$0xff]   ;;  %v354_v28 = vlaneseq  ;;  %s497_s21 = sshll.u32 %s714_s15, 7 }
  0xec   : > { %512 = vmatprep.subr.bf16.mxu0 %v730_v19  ;;  %528 = vmatprep.mubr.msk.bf16.mxu0 %vm731_vm1, %v730_v19  ;;  %v609_v22 = vld [vmem:[%s846_s26 + $0x20] sm:$0xff]   ;;  %v610_v23 = vld [vmem:[%s846_s26 + $0x18] sm:$0xff]   ;;  %v611_v24 = vld [vmem:[%s846_s26 + $0x10] sm:$0xff]   ;;  %v357_v30 = vstv %s497_s21  ;;  %vm383_vm3 = vcmask 7168   ;;  %p498_p3 = scmp.ne.s32.totalorder %s714_s15, 2 }
  0xed   : > { %513 = vmatpush3.bf16.xpose.msra.mxu0 %v606_v18  ;;  %v612_v25 = vld [vmem:[%s846_s26 + $0x8] sm:$0xff]   ;;  %v613_v26 = vld [vmem:[%s846_s26] sm:$0xff]   ;;  %v355_v29 = vand.u32 127, %v354_v28  ;;  %v381_v51 = vld [vmem:[#allocation4] sm:$0xff] }
  0xee   : > { %514 = vmatprep.subr.bf16.mxu0 %v730_v19  ;;  %v379_v37 = vld [vmem:[#allocation3] sm:$0xff] }
  0xef   : > { %v358_v31 = vadd.s32 %v357_v30, %v355_v29 }
  0xf1   : > { %v249_v27 = vld [vmem:[#allocation2] sm:$0xf]  ;;  %vm359_vm2 = vcmp.lt.s32.totalorder %v358_v31, 300 }
  0xf5   : > { %515 = vmatpush3.bf16.xpose.msra.mxu0 %v607_v20 }
  0xf6   : > { %516 = vmatprep.subr.bf16.mxu0 %v730_v19 }
  0xfd   : > { %517 = vmatpush3.bf16.xpose.msra.mxu0 %v608_v21 }
  0xfe   : > { %518 = vmatprep.subr.bf16.mxu0 %v730_v19 }
 0x105   : > { %519 = vmatpush3.bf16.xpose.msra.mxu0 %v609_v22 }
 0x106   : > { %520 = vmatprep.subr.bf16.mxu0 %v730_v19 }
 0x10d   : > { %521 = vmatpush3.bf16.xpose.msra.mxu0 %v610_v23 }
 0x10e   : > { %522 = vmatprep.subr.bf16.mxu0 %v730_v19 }
 0x115   : > { %523 = vmatpush3.bf16.xpose.msra.mxu0 %v611_v24 }
 0x116   : > { %524 = vmatprep.subr.bf16.mxu0 %v730_v19 }
 0x11d   : > { %525 = vmatpush3.bf16.xpose.msra.mxu0 %v612_v25 }
 0x11e   : > { %526 = vmatprep.subr.bf16.mxu0 %v730_v19 }
 0x125   : > { %527 = vmatpush3.bf16.xpose.msra.mxu0 %v613_v26 }
 0x12c   : > { %529 = vmatmul.mubr.bf16.vlgmr.msra.gmra.mxu0 %v249_v27 }
 0x1ec   : > { %v348_v32 = vpop.f32.mrf.mxu0 }
 0x1ed   : > { %v360_v33 = vsel %vm359_vm2, %v348_v32, -inf }
 0x1ee   : > { %361 = vmax.xlane.f32.xlu0 %v360_v33  ;;  %v530_v34 = vpop.f32.mrf.mxu0 }
 0x1f0   : > { %v351_v35 = vpop.f32.mrf.mxu0 }
 0x1f2   : > { %v531_v36 = vpop.f32.mrf.mxu0 }
 0x277   : > { %v362_v38 = vpop.xlane.xlu0 %361 }
 0x278   : > { %vm363_vm4 = vcmp.eq.f32.partialorder %v360_v33, %v362_v38  ;;  %vm380_vm5 = vcmp.gt.f32.partialorder %v362_v38, %v379_v37 }
 0x279   : > { %v386_v39 = vsel %vm380_vm5, %v362_v38, %v379_v37  ;;  %v364_v40 = vsel %vm363_vm4, %v358_v31, 2147483647 }
 0x27a   : > { %387 = vst.msk [vmem:[#allocation3] sm:$0xff] %vm383_vm3, %v386_v39  ;;  %v366_v41 = vshra.s32 %v364_v40, 16  ;;  %v365_v43 = vand.u32 65535, %v364_v40 }
 0x27c   : > { %v368_v42 = vcvt.s32.f32 %v366_v41  ;;  %v367_v45 = vcvt.s32.f32 %v365_v43 }
 0x27e   : > { %369 = vmin.xlane.f32.xlu0 %v368_v42 }
 0x307   : > { %v370_v44 = vpop.xlane.xlu0 %369 }
 0x308   : > { %vm371_vm6 = vcmp.eq.f32.partialorder %v368_v42, %v370_v44  ;;  %v376_v47 = vcvt.f32.s32 %v370_v44 }
 0x309   : > { %v372_v46 = vsel %vm371_vm6, %v367_v45, inf }
 0x30a   : > { %373 = vmin.xlane.f32.xlu1 %v372_v46  ;;  %v377_v49 = vshll.u32 %v376_v47, 16 }
 0x393   : > { %v374_v48 = vpop.xlane.xlu1 %373 }
 0x394   : > { %v375_v50 = vcvt.f32.s32 %v374_v48 }
 0x395   : > { %391 = sbr.rel (%p498_p3) target bundleno = 930 (0x3a2), region = 48 }
 0x396   : > { %v378_v52 = vadd.s32 %v377_v49, %v375_v50 }
 0x398   : > { %v382_v53 = vsel %vm380_vm5, %v378_v52, %v381_v51 }
 0x399   : > { %384 = vst.msk [vmem:[#allocation4] sm:$0xff] %vm383_vm3, %v382_v53 }
 0x3a0   : > { %v392_v54 = vld [vmem:[#allocation4] sm:$0xff] }
 0x3a1   : > { %393 = vst.msk [vmem:[%s895_s3] sm:$0xff] %vm383_vm3, %v392_v54 }
 0x3a2 PF: > { %s17_s17 = sadd.s32 1, %s722_s17   ;;  %s905_s12 = smov %s706_s13 }
 0x3a3   : > { %p14_p4 = scmp.ge.s32.totalorder %s17_s17, 5   ;;  %s906_s13 = smov %s710_s14 }
 0x3a4   : > { %s907_s14 = smov %s837_s4  ;;  %s908_s15 = smov %s718_s16 }
 0x3a5   : > { %s909_s16 = smov %s911_s30  ;;  %16 = sbr.rel (!%p14_p4) target bundleno = 5 (0x5), region = 86 }
 0x3aa   :  { %413 = vsyncpa [#allocation6], 1 }
 0x3ab   :  { %415 = vsyncpa [#allocation6 + $0x1], 1 }
 0x3ac   :  { %416 = vsyncpa [#allocation8], 1 }
 0x3ad   :  { %418 = vsyncpa [#allocation8 + $0x1], 1 }

</bundles_post_ra>
